<compile_context>
chip_gen: v7x
topology: tpu7x:2x2x1
jax: 0.10.0
libtpu: 0.0.40
codegen_flags: <defaults>
</compile_context>

<pallas_src>
import jax
import jax.numpy as jnp
from jax.experimental import pallas as pl
from jax.experimental.pallas import tpu as pltpu


# ------------------------------- Pallas kernel --------------------------------


def attention_block_kernel(params_ref, gate_ref, skip_ref, out_ref):
    """Channel-major tile: gate_ref (Fg, Tp), skip_ref (Fl, Tp), out_ref (Fl, Tp).

    params_ref is a packed (nc, Fg+Fl+3) table (BN already folded):
      [:, 0:Fg]         Wg^T
      [:, Fg:Fg+Fl]     Wx^T
      [:, Fg+Fl]        bg + bx   (fused pre-ReLU bias)
      [:, Fg+Fl+1]      wp        (psi projection weights)
      [:, Fg+Fl+2]      bp        (psi bias, replicated across rows)
    """
    Fg = gate_ref.shape[0]
    Fl = skip_ref.shape[0]

    g = gate_ref[...].astype(jnp.float32)            # (Fg, Tp)
    x = skip_ref[...].astype(jnp.float32)            # (Fl, Tp)
    prm = params_ref[...]                            # (nc, Fg+Fl+3), f32

    wg = prm[:, 0:Fg]                                # (nc, Fg)
    wx = prm[:, Fg:Fg + Fl]                          # (nc, Fl)
    b = prm[:, Fg + Fl:Fg + Fl + 1]                  # (nc, 1)
    wp = prm[:, Fg + Fl + 1:Fg + Fl + 2]             # (nc, 1)
    bp = prm[0:1, Fg + Fl + 2:Fg + Fl + 3]           # (1, 1)

    # Both branch 1x1 convs as channel-major MXU matmuls, single fused bias add.
    s = (jnp.dot(wg, g, preferred_element_type=jnp.float32)
         + jnp.dot(wx, x, preferred_element_type=jnp.float32)
         + b)                                        # (nc, Tp)
    r = jnp.maximum(s, 0.0)

    # Width-1 psi projection as VPU MAC + cross-sublane (XLU) reduce; sigmoid
    # runs on the EUP.  Avoids a wasteful N=1 MXU matmul and masked stores.
    psi = jax.nn.sigmoid(jnp.sum(r * wp, axis=0, keepdims=True) + bp)  # (1, Tp)

    out_ref[...] = (x * psi).astype(out_ref.dtype)   # lane-dense store


# --------------------------------- wrapper ------------------------------------


def attention_block(gate, skip, folded_params, *, tile_p=2048):
    """gate: (N, F_g, H, W), skip: (N, F_l, H, W)  (NCHW, like PyTorch).
    folded_params: (Wg, bg, Wx, bx, Wp, bp) with BN folded in,
      Wg:(F_g,nc) bg:(1,nc) Wx:(F_l,nc) bx:(1,nc) Wp:(nc,1) bp:(1,1)."""
    N, Fg, H, W = gate.shape
    Fl = skip.shape[1]
    HW = H * W

    wg, bg, wx, bx, wp, bp = folded_params
    nc = wg.shape[1]

    # Pack all folded weights/biases into one small table kept resident in VMEM.
    packed = jnp.concatenate(
        [
            wg.T.astype(jnp.float32),                      # (nc, Fg)
            wx.T.astype(jnp.float32),                      # (nc, Fl)
            (bg[0] + bx[0]).astype(jnp.float32)[:, None],  # (nc, 1)
            wp.astype(jnp.float32),                        # (nc, 1)
            jnp.full((nc, 1), bp[0, 0], jnp.float32),      # (nc, 1)
        ],
        axis=1,
    )                                                      # (nc, Fg+Fl+3)

    # Channel-major: NCHW is already pixels-last, so only a free reshape is
    # needed.  Pick a large lane-dense pixel tile and pad HW up to it.
    tp = max(128, min(int(tile_p), pl.cdiv(HW, 128) * 128))
    HW_pad = pl.cdiv(HW, tp) * tp
    gate_r = gate.reshape(N, Fg, HW)
    skip_r = skip.reshape(N, Fl, HW)
    if HW_pad != HW:
        pad = ((0, 0), (0, 0), (0, HW_pad - HW))
        gate_r = jnp.pad(gate_r, pad)
        skip_r = jnp.pad(skip_r, pad)

    grid = (N, HW_pad // tp)

    P = N * HW
    itemsize = jnp.dtype(skip.dtype).itemsize
    cost = pl.CostEstimate(
        flops=int(P * (2 * nc * (Fg + Fl) + 3 * nc + Fl + 2)),
        transcendentals=int(P),
        bytes_accessed=int(P * (Fg + 2 * Fl) * itemsize + packed.size * 4),
    )

    out_p = pl.pallas_call(
        attention_block_kernel,
        out_shape=jax.ShapeDtypeStruct((N, Fl, HW_pad), skip.dtype),
        grid_spec=pltpu.PrefetchScalarGridSpec(
            num_scalar_prefetch=0,
            grid=grid,
            in_specs=[
                pl.BlockSpec((nc, Fg + Fl + 3), lambda n, j: (0, 0)),   # params
                pl.BlockSpec((None, Fg, tp), lambda n, j: (n, 0, j)),   # gate
                pl.BlockSpec((None, Fl, tp), lambda n, j: (n, 0, j)),   # skip
            ],
            out_specs=pl.BlockSpec((None, Fl, tp), lambda n, j: (n, 0, j)),
        ),
        compiler_params=pltpu.CompilerParams(
            dimension_semantics=("parallel", "parallel")),
        cost_estimate=cost,
    )(packed, gate_r, skip_r)

    if HW_pad != HW:
        out_p = out_p[:, :, :HW]
    return out_p.reshape(N, Fl, H, W)


# ---------------- deterministic parameter construction / BN folding -----------


def _conv1x1_params(kw, kb, cin, cout, dtype):
    bound = (1.0 / cin) ** 0.5
    w = jax.random.uniform(kw, (cout, cin), dtype, minval=-bound, maxval=bound)
    b = jax.random.uniform(kb, (cout,), dtype, minval=-bound, maxval=bound)
    return w, b


def _bn_params(keys, c, dtype):
    kg, kb, km, kv = keys
    gamma = 1.0 + 0.1 * jax.random.normal(kg, (c,), dtype)
    beta = 0.1 * jax.random.normal(kb, (c,), dtype)
    running_mean = 0.1 * jax.random.normal(km, (c,), dtype)
    running_var = jnp.abs(jax.random.normal(kv, (c,), dtype)) + 0.5
    return gamma, beta, running_mean, running_var


def _fold_conv_bn(w, b, gamma, beta, mean, var, eps=1e-5):
    """Fold y = BN(conv1x1(x)) into x @ W' + b'.  w:(cout,cin) -> W':(cin,cout)."""
    scale = gamma / jnp.sqrt(var + eps)
    w_f = (w * scale[:, None]).T          # (cin, cout)
    b_f = (b - mean) * scale + beta       # (cout,)
    return w_f, b_f[None, :]


def init_attention_block_params(key, F_g, F_l, n_coefficients, dtype=jnp.float32):
    ks = jax.random.split(key, 18)
    wg, bg = _conv1x1_params(ks[0], ks[1], F_g, n_coefficients, dtype)
    wx, bx = _conv1x1_params(ks[2], ks[3], F_l, n_coefficients, dtype)
    wp, bp = _conv1x1_params(ks[4], ks[5], n_coefficients, 1, dtype)
    bn_g = _bn_params(ks[6:10], n_coefficients, dtype)
    bn_x = _bn_params(ks[10:14], n_coefficients, dtype)
    bn_p = _bn_params(ks[14:18], 1, dtype)
    wg_f, bg_f = _fold_conv_bn(wg, bg, *bn_g)
    wx_f, bx_f = _fold_conv_bn(wx, bx, *bn_x)
    wp_f, bp_f = _fold_conv_bn(wp, bp, *bn_p)
    return (wg_f, bg_f, wx_f, bx_f, wp_f, bp_f)


# ------------------------------ pure-JAX reference ----------------------------


def attention_block_reference(gate, skip, folded_params):
    wg, bg, wx, bx, wp, bp = folded_params

    def conv(x, w, b):  # x: NCHW, w: (cin, cout), b: (1, cout)
        return jnp.einsum("nchw,cd->ndhw", x, w) + b[0][None, :, None, None]

    g1 = conv(gate, wg, bg)
    x1 = conv(skip, wx, bx)
    p = jnp.maximum(g1 + x1, 0.0)
    psi = jax.nn.sigmoid(conv(p, wp, bp))
    return skip * psi


if __name__ == "__main__":
    # Small shapes consistent with the module: AttentionBlock(F_g=4, F_l=4,
    # n_coefficients=8, hidden_channels=32); hidden_channels is unused in forward.
    N, F_g, F_l, n_coef, H, W = 2, 4, 4, 8, 16, 16

    key = jax.random.PRNGKey(0)
    k_gate, k_skip, k_params = jax.random.split(key, 3)
    gate = jax.random.normal(k_gate, (N, F_g, H, W), jnp.float32)
    skip = jax.random.normal(k_skip, (N, F_l, H, W), jnp.float32)

    params = init_attention_block_params(k_params, F_g, F_l, n_coef)

    out = attention_block(gate, skip, params)
    out = jax.block_until_ready(out)

    ref = attention_block_reference(gate, skip, params)
    assert out.shape == (N, F_l, H, W)
    assert jnp.allclose(out, ref, atol=1e-5, rtol=1e-5), "mismatch vs reference"

    print("KERNEL_OK")
</pallas_src>

<mosaic_0001>
module attributes {stable_mosaic.version = 11 : i64} {
  func.func @attention_block_kernel(%arg0: i32, %arg1: i32, %arg2: memref<8x11xf32, #tpu.memory_space<vmem>>, %arg3: memref<1x4x256xf32, #tpu.memory_space<vmem>>, %arg4: memref<1x4x256xf32, #tpu.memory_space<vmem>>, %arg5: memref<1x4x256xf32, #tpu.memory_space<vmem>>) attributes {dimension_semantics = [#tpu.dimension_semantics<parallel>, #tpu.dimension_semantics<parallel>], iteration_bounds = array<i64: 2, 1>, scalar_prefetch = 0 : i64, scratch_operands = 0 : i64, tpu.core_type = #tpu.core_type<tc>, window_params = [{pipeline_mode = #tpu.pipeline_mode<synchronous>, transform_indices = @transform_0, window_bounds = array<i64: 8, 11>}, {transform_indices = @transform_1, window_bounds = array<i64: 1, 4, 256>}, {transform_indices = @transform_2, window_bounds = array<i64: 1, 4, 256>}, {transform_indices = @transform_3, window_bounds = array<i64: 1, 4, 256>}]} {
    %c0 = arith.constant 0 : index
    %c0_0 = arith.constant 0 : index
    %c0_1 = arith.constant 0 : index
    %0 = vector.load %arg3[%c0, %c0_0, %c0_1] : memref<1x4x256xf32, #tpu.memory_space<vmem>>, vector<1x4x256xf32>
    %1 = vector.shape_cast %0 : vector<1x4x256xf32> to vector<4x256xf32>
    %c0_2 = arith.constant 0 : index
    %c0_3 = arith.constant 0 : index
    %c0_4 = arith.constant 0 : index
    %2 = vector.load %arg4[%c0_2, %c0_3, %c0_4] : memref<1x4x256xf32, #tpu.memory_space<vmem>>, vector<1x4x256xf32>
    %3 = vector.shape_cast %2 : vector<1x4x256xf32> to vector<4x256xf32>
    %c0_5 = arith.constant 0 : index
    %c0_6 = arith.constant 0 : index
    %4 = vector.load %arg2[%c0_5, %c0_6] : memref<8x11xf32, #tpu.memory_space<vmem>>, vector<8x11xf32>
    %5 = vector.extract_strided_slice %4 {offsets = [0, 0], sizes = [8, 4], strides = [1, 1]} : vector<8x11xf32> to vector<8x4xf32>
    %6 = vector.extract_strided_slice %4 {offsets = [0, 4], sizes = [8, 4], strides = [1, 1]} : vector<8x11xf32> to vector<8x4xf32>
    %7 = vector.extract_strided_slice %4 {offsets = [0, 8], sizes = [8, 1], strides = [1, 1]} : vector<8x11xf32> to vector<8x1xf32>
    %8 = vector.extract_strided_slice %4 {offsets = [0, 9], sizes = [8, 1], strides = [1, 1]} : vector<8x11xf32> to vector<8x1xf32>
    %9 = vector.extract_strided_slice %4 {offsets = [0, 10], sizes = [1, 1], strides = [1, 1]} : vector<8x11xf32> to vector<1x1xf32>
    %cst = arith.constant dense<0.000000e+00> : vector<8x256xf32>
    %10 = tpu.matmul %5, %1, %cst {dimension_numbers = #tpu.dot_dimension_numbers<[1], [0], [0], [1], [0, 0, 1, 1], [], []>} : vector<8x4xf32>, vector<4x256xf32>, vector<8x256xf32> -> vector<8x256xf32>
    %cst_7 = arith.constant dense<0.000000e+00> : vector<8x256xf32>
    %11 = tpu.matmul %6, %3, %cst_7 {dimension_numbers = #tpu.dot_dimension_numbers<[1], [0], [0], [1], [0, 0, 1, 1], [], []>} : vector<8x4xf32>, vector<4x256xf32>, vector<8x256xf32> -> vector<8x256xf32>
    %12 = arith.addf %10, %11 : vector<8x256xf32>
    %13 = vector.broadcast %7 : vector<8x1xf32> to vector<8x256xf32>
    %14 = arith.addf %12, %13 : vector<8x256xf32>
    %cst_8 = arith.constant 0.000000e+00 : f32
    %15 = vector.broadcast %cst_8 : f32 to vector<8x256xf32>
    %16 = arith.maximumf %14, %15 : vector<8x256xf32>
    %17 = vector.broadcast %8 : vector<8x1xf32> to vector<8x256xf32>
    %18 = arith.mulf %16, %17 : vector<8x256xf32>
    %cst_9 = arith.constant dense<0.000000e+00> : vector<256xf32>
    %19 = vector.multi_reduction <add>, %18, %cst_9 [0] : vector<8x256xf32> to vector<256xf32>
    %20 = vector.shape_cast %19 : vector<256xf32> to vector<1x256xf32>
    %21 = vector.broadcast %9 : vector<1x1xf32> to vector<1x256xf32>
    %22 = arith.addf %20, %21 : vector<1x256xf32>
    %23 = arith.negf %22 : vector<1x256xf32>
    %24 = math.exp %23 : vector<1x256xf32>
    %cst_10 = arith.constant 1.000000e+00 : f32
    %25 = vector.broadcast %cst_10 : f32 to vector<1x256xf32>
    %26 = arith.addf %25, %24 : vector<1x256xf32>
    %27 = arith.divf %25, %26 : vector<1x256xf32>
    %28 = vector.broadcast %27 : vector<1x256xf32> to vector<4x256xf32>
    %29 = arith.mulf %3, %28 : vector<4x256xf32>
    %c0_11 = arith.constant 0 : index
    %c0_12 = arith.constant 0 : index
    %c0_13 = arith.constant 0 : index
    %30 = vector.load %arg5[%c0_11, %c0_12, %c0_13] : memref<1x4x256xf32, #tpu.memory_space<vmem>>, vector<1x4x256xf32>
    %31 = vector.shape_cast %30 : vector<1x4x256xf32> to vector<4x256xf32>
    %32 = vector.shape_cast %29 : vector<4x256xf32> to vector<1x4x256xf32>
    tpu.vector_store %arg5[%c0_11, %c0_12, %c0_13], %32 {strides = array<i32>} : memref<1x4x256xf32, #tpu.memory_space<vmem>>, vector<1x4x256xf32>,
    return
  }
  func.func @transform_0(%arg0: i32, %arg1: i32) -> (i32, i32) {
    %c0_i32 = arith.constant 0 : i32
    %c0_i32_0 = arith.constant 0 : i32
    %c0_i32_1 = arith.constant 0 : i32
    return %c0_i32, %c0_i32_0 : i32, i32
  }
  func.func @transform_1(%arg0: i32, %arg1: i32) -> (i32, i32, i32) {
    %c0_i32 = arith.constant 0 : i32
    %c0_i32_0 = arith.constant 0 : i32
    return %arg0, %c0_i32, %arg1 : i32, i32, i32
  }
  func.func @transform_2(%arg0: i32, %arg1: i32) -> (i32, i32, i32) {
    %c0_i32 = arith.constant 0 : i32
    %c0_i32_0 = arith.constant 0 : i32
    return %arg0, %c0_i32, %arg1 : i32, i32, i32
  }
  func.func @transform_3(%arg0: i32, %arg1: i32) -> (i32, i32, i32) {
    %c0_i32 = arith.constant 0 : i32
    %c0_i32_0 = arith.constant 0 : i32
    return %arg0, %c0_i32, %arg1 : i32, i32, i32
  }
}

</mosaic_0001>

<bundles_post_ra>
// kernel: tpu_custom_call.1
= control target key start
LH: loop header
LB: loop body
LE: loop exit
PB: predicated region body
PF: predicated region fallthrough
CT: control target
= control target key end

     0   :  { %8 = vsyncpa [#allocation3], 0  ;;  %s1218_s0 = inlined_call_operand.hbm [shape: f32[8,11], index: 0, kind: input, shape index: {}]   ;;  %s1219_s1 = inlined_call_operand.hbm [shape: f32[2,4,256], index: 1, kind: input, shape index: {}]   ;;  %s1220_s2 = inlined_call_operand.hbm [shape: f32[2,4,256], index: 2, kind: input, shape index: {}]   ;;  %s1221_s3 = inlined_call_operand.hbm [shape: f32[2,4,256], index: 3, kind: output, shape index: {}]  }
   0x1   :  { %9 = vsyncpa [#allocation6], 0 }
   0x2   :  { %11 = vsyncpa [#allocation6 + $0x1], 0 }
   0x3   :  { %12 = vsyncpa [#allocation4], 0 }
   0x4   :  { %14 = vsyncpa [#allocation4 + $0x1], 0  ;;  %s956_s12 = smov 0   ;;  %s958_s13 = smov 0  }
   0x5   :  { %s960_s14 = smov 0   ;;  %s962_s15 = smov 0  }
   0x6   :  { %s964_s16 = smov 0   ;;  %s966_s17 = smov 0  }
   0x7 LB: > { %s32_s18 = sadd.s32 1, %s921_s16  ;;  %s62_s19 = sadd.s32 1, %s913_s14  ;;  %s925_s17 = sphi %s966_s17, %s20_s17   ;;  %s921_s16 = sphi %s964_s16, %s1247_s16   ;;  %s917_s15 = sphi %s962_s15, %s1246_s15   ;;  %s913_s14 = sphi %s960_s14, %s1245_s14   ;;  %s909_s13 = sphi %s958_s13, %s1244_s13   ;;  %s905_s12 = sphi %s956_s12, %s1243_s12  }
   0x8   : > { %p34_p0 = scmp.ge.s32.totalorder %s32_s18, 2  ;;  %p69_p1 = scmp.ne.s32.totalorder %s913_s14, %s909_s13 }
   0x9   : > { %p70_p2 = scmp.eq.s32.totalorder %s925_s17, 0  ;;  %p680_p5 = scmp.lt.s32.totalorder %s925_s17, 2 }
   0xa   : > { %s1249_s18 = smov (%p34_p0, %s32_s18), 0  ;;  %s166_s21 = sand.u32 1, %s925_s17  }
   0xb   : > { %p71_p4 = por %p70_p2, %p69_p1  ;;  %s57_s20 = ssub.s32 %s921_s16, %s1249_s18 }
   0xc   : > { %p60_p6 = scmp.eq.s32.totalorder %s57_s20, 0  ;;  %s168_s22 = sand.u32 1, %s913_s14  }
   0xd   : > { %s649_s23 = sshll.u32 %s921_s16, 7  ;;  %s1006_s25 = sshll.u32 %s168_s22, 3 }
   0xe   : > { %s1004_s24 = scalar_select %p60_p6, %s913_s14, %s62_s19  }
   0xf   : > { %s1013_s28 = scalar_lea.hbm %s1219_s1, %s649_s23  ;;  %p1015_p7 = pnand %p680_p5, %p71_p4 }
  0x10   : > { %s170_s30 = scalar_lea.vmem [#allocation5], %s1006_s25  ;;  %s1022_s5 = scalar_lea.sflag [#allocation6], %s166_s21 }
  0x11   : > { %s180_s4 = sshll.u32 %s170_s30, 4  ;;  %s751_s6 = scalar_lea.hbm %s1013_s28, 128  ;;  %s1020_s4 = int_to_ptr.vmem [resolvable:$true] %s180_s4 }
  0x12   : > { %p752_p8 = scmp.ne.s32.totalorder %s1013_s28, %s751_s6  ;;  %p753_p9 = pneg %p1015_p7 }
  0x13   : > { %s756_s9 = scalar_lea.hbm %s1219_s1, 256  ;;  %p757_p12 = scmp.lt.u32.totalorder %s1013_s28, %s1219_s1 }
  0x14   : > { %p754_p10 = pnand %p753_p9, %p752_p8  ;;  %p758_p13 = scmp.lt.u32.totalorder %s756_s9, %s751_s6 }
  0x15   : > { %p760_p2 = scmp.lt.u32.totalorder %s751_s6, %s1013_s28 }
  0x16   : > { %p755_p11 = pneg %p754_p10  ;;  %p759_p0 = por %p758_p13, %p757_p12 }
  0x18   : > { %p761_p4 = por %p760_p2, %p759_p0 }
  0x1a   : > { %p762_p5 = pnand %p761_p4, %p755_p11 }
  0x1c   : > { %765 = shalt.err (!%p762_p5)
}
  0x1d   : > { %s766_s19 = scalar_lea.vmem %s1020_s4, 128  ;;  %s927_s20 = smov [#allocation5]  }
  0x1e   : > { %p767_p6 = scmp.ne.s32.totalorder %s1020_s4, %s766_s19  ;;  %s771_s21 = sshll.u32 %s927_s20, 4  ;;  %s772_s21 = int_to_ptr.vmem [resolvable:$false] %s771_s21 }
  0x1f   : > { %s773_s22 = scalar_lea.vmem %s772_s21, 256  ;;  %p774_p3 = scmp.lt.s32.totalorder %s1020_s4, %s772_s21 }
  0x20   : > { %p769_p8 = pnand %p767_p6, %p753_p9  ;;  %p775_p12 = scmp.lt.s32.totalorder %s773_s22, %s766_s19 }
  0x22   : > { %p770_p10 = pneg %p769_p8  ;;  %p776_p13 = por %p775_p12, %p774_p3 }
  0x24   : > { %p777_p0 = pnand %p776_p13, %p770_p10 }
  0x26   : > { %780 = shalt.err (!%p777_p0)
}
  0x27   : > { %671 = dma.hbm_to_vmem [thread:$0]  (!%p1015_p7), %s1013_s28, 128, %s1020_s4, %s1022_s5  }
  0x28   : > { %s1051_s26 = sadd.s32 4294967295, %s925_s17   ;;  %s621_s27 = sadd.s32 4294967294, %s925_s17  }
  0x29   : > { %p75_p3 = scmp.ne.s32.totalorder %s909_s13, %s905_s12  ;;  %p1222_p11 = scmp.eq.s32.totalorder %s1051_s26, 0 }
  0x2a   : > { %p129_p2 = scmp.eq.s32.totalorder %s1051_s26, 1  ;;  %p135_p4 = scmp.eq.s32.totalorder %s621_s27, 1 }
  0x2b   : > { %p622_p5 = scmp.ge.s32.totalorder %s925_s17, 1  ;;  %p1061_p6 = por %p1222_p11, %p75_p3 }
  0x2c   : > { %p1068_p8 = por %p129_p2, %p69_p1  ;;  %p1072_p10 = por %p135_p4, %p75_p3 }
  0x2d   : > { %s1228_s30 = scalar_select %p1061_p6, 1, 0 }
  0x2e   : > { %s1229_s28 = scalar_select %p1068_p8, 1, 0 }
  0x2f   : > { %s1230_s4 = scalar_select %p1072_p10, 1, 0 }
  0x30   : > { %p142_p12 = scmp.lt.s32.totalorder %s925_s17, 3  ;;  %s1082_s8 = scalar_lea.hbm %s1220_s2, %s649_s23 }
  0x31   : > { %s928_s10 = smov [#allocation2]   ;;  %s191_s19 = scalar_lea.vmem [#allocation7], %s1006_s25 }
  0x32   : > { %p1084_p13 = pnand %p622_p5, %p142_p12  ;;  %s1088_s11 = sshll.u32 %s928_s10, 4  ;;  %s156_s11 = int_to_ptr.vmem [resolvable:$true] %s1088_s11 }
  0x33   : > { %s201_s20 = sshll.u32 %s191_s19, 4  ;;  %s781_s21 = scalar_lea.hbm %s1082_s8, 128  ;;  %s202_s20 = int_to_ptr.vmem [resolvable:$true] %s201_s20 }
  0x34   : > { %s1231_s9 = scalar_select %p1084_p13, 1, 0 }
  0x35   : > { %p782_p0 = scmp.ne.s32.totalorder %s1082_s8, %s781_s21  ;;  %s786_s27 = scalar_lea.hbm %s1220_s2, 256 }
  0x36   : > { %p787_p4 = scmp.lt.u32.totalorder %s1082_s8, %s1220_s2  ;;  %p788_p5 = scmp.lt.u32.totalorder %s786_s27, %s781_s21 }
  0x37   : > { %p784_p3 = pnand %p782_p0, %p753_p9  ;;  %p790_p11 = scmp.lt.u32.totalorder %s781_s21, %s1082_s8 }
  0x38   : > { %p789_p12 = por %p788_p5, %p787_p4 }
  0x39   : > { %p785_p2 = pneg %p784_p3 }
  0x3a   : > { %p791_p10 = por %p790_p11, %p789_p12 }
  0x3c   : > { %p792_p1 = pnand %p791_p10, %p785_p2 }
  0x3e   : > { %795 = shalt.err (!%p792_p1)
}
  0x3f   : > { %s796_s25 = scalar_lea.vmem %s202_s20, 128  ;;  %s929_s10 = smov [#allocation7]  }
  0x40   : > { %p797_p8 = scmp.ne.s32.totalorder %s202_s20, %s796_s25  ;;  %s801_s19 = sshll.u32 %s929_s10, 4  ;;  %s802_s19 = int_to_ptr.vmem [resolvable:$false] %s801_s19 }
  0x41   : > { %s803_s23 = scalar_lea.vmem %s802_s19, 256  ;;  %p804_p6 = scmp.lt.s32.totalorder %s202_s20, %s802_s19 }
  0x42   : > { %p799_p0 = pnand %p797_p8, %p753_p9  ;;  %p805_p13 = scmp.lt.s32.totalorder %s803_s23, %s796_s25 }
  0x44   : > { %p800_p3 = pneg %p799_p0  ;;  %p806_p4 = por %p805_p13, %p804_p6 }
  0x46   : > { %p807_p5 = pnand %p806_p4, %p800_p3 }
  0x48   : > { %810 = shalt.err (!%p807_p5)
}
  0x49   : > { %674 = dma.hbm_to_vmem [thread:$0]  (!%p1015_p7), %s1082_s8, 128, %s202_s20, %s1022_s5  }
  0x4a   : > { %p1232_p9 = scmp.eq.s32.totalorder %s1051_s26, 0  ;;  %p1233_p11 = scmp.ne.s32.totalorder %s1231_s9, 0 }
  0x4b   : > { %s811_s6 = scalar_lea.hbm %s1218_s0, 128 }
  0x4c   : > { %p1234_p8 = pneg %p1233_p11  ;;  %p812_p6 = scmp.ne.s32.totalorder %s1218_s0, %s811_s6 }
  0x4d   : > { %p818_p2 = scmp.lt.u32.totalorder %s811_s6, %s1218_s0 }
  0x4e   : > { %p1119_p10 = pnand %p1234_p8, %p1232_p9 }
  0x50   : > { %p813_p13 = pneg %p1119_p10 }
  0x52   : > { %p814_p7 = pnand %p813_p13, %p812_p6 }
  0x54   : > { %p815_p1 = pneg %p814_p7 }
  0x56   : > { %p820_p12 = pnand %p818_p2, %p815_p1 }
  0x58   : > { %823 = shalt.err (!%p820_p12)
}
  0x59   : > { %s824_s20 = scalar_lea.vmem %s156_s11, 128  ;;  %p832_p5 = scmp.lt.s32.totalorder %s156_s11, %s156_s11 }
  0x5a   : > { %p825_p0 = scmp.ne.s32.totalorder %s156_s11, %s824_s20  ;;  %p833_p9 = scmp.lt.s32.totalorder %s824_s20, %s824_s20 }
  0x5c   : > { %p827_p3 = pnand %p825_p0, %p813_p13  ;;  %p834_p8 = por %p833_p9, %p832_p5 }
  0x5e   : > { %p828_p4 = pneg %p827_p3 }
  0x60   : > { %p835_p11 = pnand %p834_p8, %p828_p4 }
  0x62   : > { %838 = shalt.err (!%p835_p11)
}
  0x63   : > { %667 = dma.hbm_to_vmem [thread:$0]  (!%p1119_p10), %s1218_s0, 128, %s156_s11, [#allocation3]  }
  0x64   : > { %p1236_p6 = scmp.ne.s32.totalorder %s1231_s9, 0 }
  0x65   : > { %p1237_p7 = scmp.eq.s32.totalorder (!%p1236_p6), %s1051_s26, 0 }
  0x66   : > { %210 = sbr.rel (%p1236_p6) target bundleno = 514 (0x202), region = 32 }
  0x6d   : > { %892 = dma.done.wait (%p1237_p7), [#allocation3], 128   ;;  %p1238_p13 = pmov %p1237_p7 }
  0x6e   : > { %s216_s19 = sand.u32 1, %s1051_s26   ;;  %s218_s23 = sand.u32 1, %s909_s13  }
  0x6f   : > { %894 = vsyncadd (%p1238_p13), [#allocation3], 4294967168  ;;  %s1149_s21 = sshll.u32 %s218_s23, 3  ;;  %s217_s11 = scalar_lea.sflag [#allocation6], %s216_s19 }
  0x70   : > { %s220_s22 = scalar_lea.vmem [#allocation5], %s1149_s21  ;;  %p1239_p11 = scmp.ne.s32.totalorder %s1228_s30, 0 }
  0x72   : > { %896 = dma.done.wait (%p1239_p11), %s217_s11, 256  }
  0x73   : > { %898 = vsyncadd (%p1239_p11), %s217_s11, 4294967040  ;;  %v930_v0 = vmov 0.0   ;;  %v931_v1 = vmov 8   ;;  %v932_v2 = vmov 9   ;;  %v262_v3 = vld [vmem:[#allocation2] sm:$0xff]  ;;  %v260_v4 = vld [vmem:[%s220_s22] sm:$0xff]  ;;  %v470_v45 = vlaneseq }
  0x74   : > { %419 = vmatprep.mubr.f32.mxu0 %v930_v0  ;;  %340 = vmatprep.mubr.f32.mxu1 %v930_v0  ;;  %vm271_vm0 = vcmask 1043456   ;;  %s229_s26 = scalar_lea.vmem [#allocation7], %s1149_s21  ;;  %s933_s9 = smov 124   ;;  %v348_v6 = vcombine.high %v260_v4, %v260_v4  ;;  %vm268_vm1 = vcmask 31744   ;;  %v934_v8 = vmov 10  }
  0x75   : > { %737 = vset.pattern.permute.xlu0 %v931_v1  ;;  %738 = vset.pattern.permute.xlu1 %v932_v2  ;;  %v1157_v5 = vld [vmem:[%s229_s26] sm:$0xff]  ;;  %v471_v46 = vshrl.u32 %v470_v45, 7  ;;  %s651_s30 = sshll.u32 %s917_s15, 7  ;;  %s256_s27 = scalar_lea.vmem [#allocation8], %s1149_s21 }
  0x76   : > { %264 = vrot.lane.b32.xlu0 %v262_v3, %s933_s9  ;;  %v267_v7 = vcombine.high %v1157_v5, %v1157_v5  ;;  %435 = vperm.xlu1 %738, %v262_v3   ;;  %s501_s6 = sshll.u32 %s256_s27, 4  ;;  %s1168_s5 = scalar_lea.hbm %s1221_s3, %s651_s30  ;;  %s1170_s6 = int_to_ptr.vmem [resolvable:$true] %s501_s6 }
  0x77   : > { %639 = vmatprep.subr.msk.mxu0 %vm271_vm0, %v348_v6  ;;  %v472_v47 = vsub.s32 0, %v471_v46  ;;  %s485_s8 = scalar_lea.sflag [#allocation4], %s218_s23  ;;  %s839_s20 = scalar_lea.vmem %s1170_s6, 128 }
  0x78   : > { %636 = vmatprep.subr.msk.mxu1 %vm271_vm0, %v267_v7  ;;  %640 = vmatpush1.msk.msra.mxu0 %vm271_vm0, %v260_v4  ;;  %p840_p10 = scmp.ne.s32.totalorder %s1170_s6, %s839_s20  ;;  %p1240_p1 = scmp.ne.s32.totalorder %s1229_s28, 0 }
  0x79   : > { %637 = vmatpush1.msk.msra.mxu1 %vm271_vm0, %v1157_v5  ;;  %641 = vmatmul.mubr.msk.f32.vlgmr.msra.gmra.mrb[0].mxu0 %vm268_vm1, %v262_v3  ;;  %s935_s15 = smov [#allocation8]  }
  0x7a   : > { %427 = vperm.xlu0 %737, %v262_v3   ;;  %739 = vset.pattern.permute.xlu1 %v934_v8  ;;  %p841_p2 = pnand %p840_p10, %p1240_p1  ;;  %s843_s25 = sshll.u32 %s935_s15, 4  ;;  %s844_s25 = int_to_ptr.vmem [resolvable:$false] %s843_s25 }
  0x7b   : > { %453 = vperm.xlu1 %739, %v262_v3   ;;  %s845_s10 = scalar_lea.vmem %s844_s25, 256  ;;  %p846_p0 = scmp.lt.s32.totalorder %s1170_s6, %s844_s25 }
  0x7c   : > { %p842_p12 = pneg %p841_p2  ;;  %p847_p3 = scmp.lt.s32.totalorder %s845_s10, %s839_s20 }
  0x7e   : > { %740 = vset.pattern.permute.xlu0 %v934_v8  ;;  %p848_p4 = por %p847_p3, %p846_p0 }
  0x80   : > { %p849_p5 = pnand %p848_p4, %p842_p12 }
  0xe8   : > { %v265_v9 = vpop.permute.xlu0 %264 }
  0xe9   : > { %638 = vmatmul.mubr.msk.f32.vlgmr.msra.gmra.mrb[0].mxu1 %vm268_vm1, %v265_v9 }
  0xf5   : > { %v436_v19 = vpop.permute.xlu1 %435 }
  0xf9   : > { %v428_v13 = vpop.permute.xlu0 %427 }
  0xfa   : > { %v454_v33 = vpop.permute.xlu1 %453 }
 0x14c   : > { %v421_v10 = vpop.f32.mrb[0].mxu0 }
 0x14d   : > { %v423_v11 = vpop.f32.mrb[1].mxu0 }
 0x1bc   : > { %v342_v12 = vpop.f32.mrb[0].mxu1 }
 0x1bd   : > { %v422_v14 = vadd.f32 %v421_v10, %v342_v12  ;;  %v344_v15 = vpop.f32.mrb[1].mxu1 }
 0x1be   : > { %v424_v16 = vadd.f32 %v423_v11, %v344_v15 }
 0x1bf   : > { %v430_v17 = vadd.f32 %v428_v13, %v422_v14 }
 0x1c0   : > { %v431_v18 = vadd.f32 %v428_v13, %v424_v16 }
 0x1c1   : > { %v432_v20 = vmax.f32 %v430_v17, 0.0 }
 0x1c2   : > { %v433_v21 = vmax.f32 %v431_v18, 0.0 }
 0x1c3   : > { %v438_v22 = vmul.f32 %v436_v19, %v432_v20 }
 0x1c4   : > { %v439_v23 = vmul.f32 %v436_v19, %v433_v21 }
 0x1c5   : > { %v440_v24 = vrot.slane %v438_v22, 4 }
 0x1c6   : > { %v446_v25 = vrot.slane %v439_v23, 4 }
 0x1c7   : > { %v441_v26 = vadd.f32 %v440_v24, %v438_v22 }
 0x1c8   : > { %v447_v27 = vadd.f32 %v446_v25, %v439_v23 }
 0x1c9   : > { %v442_v28 = vrot.slane %v441_v26, 2 }
 0x1ca   : > { %v448_v29 = vrot.slane %v447_v27, 2 }
 0x1cb   : > { %v443_v30 = vadd.f32 %v442_v28, %v441_v26 }
 0x1cc   : > { %v449_v31 = vadd.f32 %v448_v29, %v447_v27 }
 0x1cd   : > { %v444_v32 = vrot.slane %v443_v30, 1 }
 0x1ce   : > { %v450_v34 = vrot.slane %v449_v31, 1 }
 0x1cf   : > { %v445_v35 = vadd.f32 %v444_v32, %v443_v30 }
 0x1d0   : > { %v451_v36 = vadd.f32 %v450_v34, %v449_v31 }
 0x1d1   : > { %v456_v37 = vadd.f32 %v454_v33, %v445_v35 }
 0x1d2   : > { %v457_v38 = vadd.f32 %v454_v33, %v451_v36 }
 0x1d3   : > { %v642_v39 = vmul.f32 -1.442695, %v456_v37 }
 0x1d4   : > { %v643_v40 = vmul.f32 -1.442695, %v457_v38 }
 0x1d5   : > { %743 = vpow2.f32 %v642_v39 }
 0x1d6   : > { %745 = vpow2.f32 %v643_v40 }
 0x1df   : > { %v744_v41 = vpop.eup %743 }
 0x1e0   : > { %v746_v42 = vpop.eup %745  ;;  %v464_v43 = vadd.f32 1.0, %v744_v41 }
 0x1e1   : > { %v465_v44 = vadd.f32 1.0, %v746_v42 }
 0x1e2   : > { %747 = vrcp.f32 %v464_v43 }
 0x1e3   : > { %749 = vrcp.f32 %v465_v44 }
 0x1ec   : > { %v748_v48 = vpop.eup %747 }
 0x1ed   : > { %v750_v49 = vpop.eup %749  ;;  %v473_v50 = vrot.slane %v748_v48, %v472_v47 }
 0x1ee   : > { %v477_v51 = vrot.slane %v750_v49, %v472_v47 }
 0x1f0   : > { %v480_v52 = vcombine.low %v473_v50, %v477_v51 }
 0x1f2   : > { %v482_v53 = vmul.f32 %v480_v52, %v1157_v5 }
 0x1f4   : > { %483 = vst [vmem:[%s256_s27] sm:$0xff] %v482_v53 }
 0x1f5   : > { %852 = shalt.err (!%p849_p5)
}
 0x1f6   : > { %s853_s19 = scalar_lea.hbm %s1168_s5, 128  ;;  %s857_s11 = scalar_lea.hbm %s1221_s3, 256 }
 0x1f7   : > { %p854_p9 = scmp.ne.s32.totalorder %s1168_s5, %s853_s19  ;;  %p858_p7 = scmp.lt.u32.totalorder %s1168_s5, %s1221_s3 }
 0x1f8   : > { %p859_p13 = scmp.lt.u32.totalorder %s857_s11, %s853_s19  ;;  %p861_p10 = scmp.lt.u32.totalorder %s853_s19, %s1168_s5 }
 0x1f9   : > { %p855_p8 = pnand %p854_p9, %p1240_p1 }
 0x1fa   : > { %p860_p11 = por %p859_p13, %p858_p7 }
 0x1fb   : > { %p856_p6 = pneg %p855_p8 }
 0x1fc   : > { %p862_p2 = por %p861_p10, %p860_p11 }
 0x1fe   : > { %p863_p12 = pnand %p862_p2, %p856_p6 }
 0x200   : > { %866 = shalt.err (!%p863_p12)
}
 0x201   : > { %662 = dma.vmem_to_hbm [thread:$0]  (%p1240_p1), %s1170_s6, 128, %s1168_s5, %s485_s8  }
 0x202 PF: > { %s513_s9 = sand.u32 1, %s905_s12   ;;  %p1241_p0 = scmp.ne.s32.totalorder %s1230_s4, 0 }
 0x203   : > { %p1242_p3 = scmp.ge.s32.totalorder %s925_s17, 2  ;;  %s514_s30 = scalar_lea.sflag [#allocation4], %s513_s9 }
 0x205   : > { %p676_p4 = pnand %p1242_p3, %p1241_p0 }
 0x207   : > { %900 = dma.done.wait (!%p676_p4), %s514_s30, 128  }
 0x208   : > { %902 = vsyncadd (!%p676_p4), %s514_s30, 4294967168  ;;  %s20_s17 = sadd.s32 1, %s925_s17   ;;  %s1243_s12 = smov %s909_s13 }
 0x209   : > { %p17_p5 = scmp.ge.s32.totalorder %s20_s17, 4   ;;  %s1244_s13 = smov %s913_s14 }
 0x20a   : > { %s1245_s14 = smov %s1004_s24  ;;  %s1246_s15 = smov %s921_s16 }
 0x20b   : > { %s1247_s16 = smov %s1249_s18  ;;  %19 = sbr.rel (!%p17_p5) target bundleno = 7 (0x7), region = 93 }
 0x212   :  { %519 = vsyncpa [#allocation3], 1 }
 0x213   :  { %521 = vsyncpa [#allocation3 + $0x1], 1 }
 0x214   :  { %522 = vsyncpa [#allocation6], 1 }
 0x215   :  { %524 = vsyncpa [#allocation6 + $0x1], 1 }
 0x216   :  { %525 = vsyncpa [#allocation4], 1 }
 0x217   :  { %527 = vsyncpa [#allocation4 + $0x1], 1 }

</bundles_post_ra>
